<compile_context>
chip_gen: v5e
topology: v5e:2x2
jax: 0.10.0
libtpu: 0.0.40
codegen_flags: <defaults>
</compile_context>

<pallas_src>
import functools

import jax
import jax.numpy as jnp
from jax.experimental import pallas as pl
from jax.experimental.pallas import tpu as pltpu


# ---------------------------------------------------------------------------
# Padded-VMEM accounting and generation-aware budgeting
# ---------------------------------------------------------------------------

def _sublane(dtype):
    # sublane packing: 8 rows for 4-byte, 16 for 2-byte, 32 for 1-byte dtypes
    return {4: 8, 2: 16, 1: 32}.get(jnp.dtype(dtype).itemsize, 8)


def _padded_block_bytes(block_shape, dtype):
    """Bytes a block really occupies in VMEM: last dim padded to 128 lanes,
    second-to-last padded to the dtype-dependent sublane count."""
    itemsize = jnp.dtype(dtype).itemsize
    dims = [int(d) for d in block_shape]
    if not dims:
        return itemsize
    dims[-1] = -(-dims[-1] // 128) * 128
    if len(dims) >= 2:
        s = _sublane(dtype)
        dims[-2] = -(-dims[-2] // s) * s
    n = 1
    for d in dims:
        n *= d
    return n * itemsize


def _vmem_budget_bytes():
    """Usable VMEM budget per TensorCore, gated by chip generation."""
    try:
        cap = int(pltpu.get_tpu_info().vmem_capacity_bytes)
    except Exception:
        cap = 64 << 20              # conservative fallback (smallest-VMEM part)
    if cap <= (72 << 20):           # v7x-class: 64 MiB physical -> leave headroom
        return 48 << 20
    return 100 << 20                # v5e / v6e: 128 MiB physical


def _choose_group(BH, per_item_padded_bytes, budget):
    """How many (b, h) pairs to fold into one block.

    Targets ~2 MiB of padded data per block, keeps the double-buffered
    (input + output) footprint inside half the VMEM budget, keeps >= 2 grid
    steps whenever BH >= 2 (so both v7x TensorCores get work), and divides BH
    so every block is full (no remainder handling needed)."""
    target = 2 << 20
    by_target = max(1, target // max(1, per_item_padded_bytes))
    by_vmem = max(1, (budget // 2) // max(1, 2 * per_item_padded_bytes))
    gmax = int(min(by_target, by_vmem, BH))
    if BH >= 2:
        gmax = min(gmax, BH // 2)
    gmax = max(1, gmax)
    g = 1
    for d in range(1, gmax + 1):
        if BH % d == 0:
            g = d
    return g


def _mosaic_params(in_block, out_block, dtype, budget):
    # double-buffered in + out blocks (padded) plus headroom, capped at the
    # generation-aware budget.
    need = 2 * (_padded_block_bytes(in_block, dtype)
                + _padded_block_bytes(out_block, dtype)) + (4 << 20)
    limit = int(min(budget, max(need, 16 << 20)))
    return pltpu.CompilerParams(
        dimension_semantics=("parallel",),
        vmem_limit_bytes=limit,
    )


# ---------------------------------------------------------------------------
# Kernels
# ---------------------------------------------------------------------------

def _y1_kernel(x_ref, o_ref, *, c, Z):
    """Y == 1.  x_ref: (G, c, X, Z);  o_ref: (G, X, c*Z).

    out[g, x, ci*Z + z] = in[g, ci, x, z].
    c is small and static -> unrolled.  Each iteration only touches one
    (G, X, Z) slice (block/c elements live), and when Z % 128 == 0 every
    store is an aligned, unmasked full-width 128-lane store.
    """
    for ci in range(c):
        o_ref[:, :, ci * Z:(ci + 1) * Z] = x_ref[:, ci, :, :]


def _z1_kernel(x_ref, o_ref):
    """Z == 1.  x_ref: (G, c, P=X*Y);  o_ref: (G, P, c).

    out[g, p, ci] = in[g, ci, p] -- a batched minor-dim transpose (XLU).
    Output stores are lane-dense once c is a multiple of 128 (large-channel
    case); for tiny c see the TODO(synk) note at the top of the file.
    """
    o_ref[...] = jnp.swapaxes(x_ref[...], 1, 2)


# ---------------------------------------------------------------------------
# Forward
# ---------------------------------------------------------------------------

def reshape_layer_forward(x, width):
    """Pallas implementation of ReshapeLayer.forward for 5-D NCXYZ inputs."""
    assert x.ndim == 5, "expected (B, C, X, Y, Z)"
    B, C, X, Y, Z = x.shape
    assert C % width == 0
    c = C // width
    dtype = x.dtype
    BH = B * width
    budget = _vmem_budget_bytes()

    if X == 1:
        # einsum over the singleton axis == squeeze: metadata-only reshape of
        # contiguous memory; a Pallas copy would only add an HBM round trip.
        return x.reshape(B, width, c, Y, Z)

    if Y == 1:
        # out[b,h,x,ci,z] = in[b,h,ci,x,z]
        x4 = x.reshape(BH, c, X, Z)                   # free: drop Y, fold (B, width)
        per_item = (_padded_block_bytes((c, X, Z), dtype)
                    + _padded_block_bytes((X, c * Z), dtype))
        G = _choose_group(BH, per_item, budget)
        in_block = (G, c, X, Z)
        out_block = (G, X, c * Z)
        out_flat = pl.pallas_call(
            functools.partial(_y1_kernel, c=c, Z=Z),
            out_shape=jax.ShapeDtypeStruct((BH, X, c * Z), dtype),
            grid=(BH // G,),
            in_specs=[pl.BlockSpec(in_block, lambda g: (g, 0, 0, 0))],
            out_specs=pl.BlockSpec(out_block, lambda g: (g, 0, 0)),
            compiler_params=_mosaic_params(in_block, out_block, dtype, budget),
        )(x4)
        return out_flat.reshape(B, width, X, c, Z)    # contiguous split (free)

    if Z == 1:
        # out[b,h,x,y,ci] = in[b,h,ci,x,y]
        P = X * Y
        x3 = x.reshape(BH, c, P)                      # free: drop Z, fold (B, width)
        per_item = (_padded_block_bytes((c, P), dtype)
                    + _padded_block_bytes((P, c), dtype))
        G = _choose_group(BH, per_item, budget)
        in_block = (G, c, P)
        out_block = (G, P, c)
        out_flat = pl.pallas_call(
            _z1_kernel,
            out_shape=jax.ShapeDtypeStruct((BH, P, c), dtype),
            grid=(BH // G,),
            in_specs=[pl.BlockSpec(in_block, lambda g: (g, 0, 0))],
            out_specs=pl.BlockSpec(out_block, lambda g: (g, 0, 0)),
            compiler_params=_mosaic_params(in_block, out_block, dtype, budget),
        )(x3)
        return out_flat.reshape(B, width, X, Y, c)    # contiguous split (free)

    raise Exception('Unknown shape:', (B, width, c, X, Y, Z))


def reshape_layer_reference(x, width):
    """Pure-JAX mirror of the PyTorch forward (ground truth)."""
    xr = x.reshape(x.shape[0], width, -1, *x.shape[2:])
    if xr.shape[-3] == 1:
        return jnp.einsum('bhxiyz->bhxyz', xr)
    elif xr.shape[-2] == 1:
        return jnp.einsum('bhyxiz->bhxyz', xr)
    elif xr.shape[-1] == 1:
        return jnp.einsum('bhzxyi->bhxyz', xr)
    raise Exception('Unknown shape:', xr.shape)


if __name__ == "__main__":
    width = 4  # ReshapeLayer(width=4); the module has no learned parameters.
    key = jax.random.PRNGKey(0)

    test_shapes = [
        (2, 8, 1, 16, 16),    # X == 1: pure (free) reshape path
        (2, 8, 16, 1, 16),    # Y == 1: narrow-Z path (masked Z-wide stores)
        (2, 8, 8, 1, 128),    # Y == 1: Z % 128 == 0 -> dense 128-lane stores
        (2, 8, 16, 16, 1),    # Z == 1: batched (c, X*Y) -> (X*Y, c) transpose
        (2, 16, 8, 16, 1),    # Z == 1 with c = 4
    ]

    for i, shape in enumerate(test_shapes):
        k = jax.random.fold_in(key, i)
        x = jax.random.normal(k, shape, dtype=jnp.float32)

        out = jax.block_until_ready(reshape_layer_forward(x, width))
        ref = reshape_layer_reference(x, width)

        assert out.shape == ref.shape, (shape, out.shape, ref.shape)
        assert out.dtype == ref.dtype, (shape, out.dtype, ref.dtype)
        assert bool(jnp.array_equal(out, ref)), f"mismatch for input shape {shape}"

    print("KERNEL_OK")
</pallas_src>

<mosaic_0001>
module attributes {stable_mosaic.version = 11 : i64} {
  func.func @_y1_kernel(%arg0: i32, %arg1: memref<4x2x16x16xf32, #tpu.memory_space<vmem>>, %arg2: memref<4x16x32xf32, #tpu.memory_space<vmem>>) attributes {dimension_semantics = [#tpu.dimension_semantics<parallel>], iteration_bounds = array<i64: 2>, scalar_prefetch = 0 : i64, scratch_operands = 0 : i64, tpu.core_type = #tpu.core_type<tc>, window_params = [{transform_indices = @transform_0, window_bounds = array<i64: 4, 2, 16, 16>}, {transform_indices = @transform_1, window_bounds = array<i64: 4, 16, 32>}]} {
    %c0 = arith.constant 0 : index
    %c0_0 = arith.constant 0 : index
    %c0_1 = arith.constant 0 : index
    %c0_2 = arith.constant 0 : index
    %0 = vector.load %arg1[%c0, %c0_0, %c0_1, %c0_2] : memref<4x2x16x16xf32, #tpu.memory_space<vmem>>, vector<4x1x16x16xf32>
    %1 = vector.shape_cast %0 : vector<4x1x16x16xf32> to vector<4x16x16xf32>
    %c0_3 = arith.constant 0 : index
    %c0_4 = arith.constant 0 : index
    %c0_5 = arith.constant 0 : index
    %2 = vector.load %arg2[%c0_3, %c0_4, %c0_5] : memref<4x16x32xf32, #tpu.memory_space<vmem>>, vector<4x16x16xf32>
    tpu.vector_store %arg2[%c0_3, %c0_4, %c0_5], %1 {strides = array<i32>} : memref<4x16x32xf32, #tpu.memory_space<vmem>>, vector<4x16x16xf32>,
    %c0_6 = arith.constant 0 : index
    %c1 = arith.constant 1 : index
    %c0_7 = arith.constant 0 : index
    %c0_8 = arith.constant 0 : index
    %3 = vector.load %arg1[%c0_6, %c1, %c0_7, %c0_8] : memref<4x2x16x16xf32, #tpu.memory_space<vmem>>, vector<4x1x16x16xf32>
    %4 = vector.shape_cast %3 : vector<4x1x16x16xf32> to vector<4x16x16xf32>
    %c0_9 = arith.constant 0 : index
    %c0_10 = arith.constant 0 : index
    %c16 = arith.constant 16 : index
    %5 = vector.load %arg2[%c0_9, %c0_10, %c16] : memref<4x16x32xf32, #tpu.memory_space<vmem>>, vector<4x16x16xf32>
    tpu.vector_store %arg2[%c0_9, %c0_10, %c16], %4 {strides = array<i32>} : memref<4x16x32xf32, #tpu.memory_space<vmem>>, vector<4x16x16xf32>,
    return
  }
  func.func @transform_0(%arg0: i32) -> (i32, i32, i32, i32) {
    %c0_i32 = arith.constant 0 : i32
    %c0_i32_0 = arith.constant 0 : i32
    %c0_i32_1 = arith.constant 0 : i32
    %c0_i32_2 = arith.constant 0 : i32
    return %arg0, %c0_i32, %c0_i32_0, %c0_i32_1 : i32, i32, i32, i32
  }
  func.func @transform_1(%arg0: i32) -> (i32, i32, i32) {
    %c0_i32 = arith.constant 0 : i32
    %c0_i32_0 = arith.constant 0 : i32
    %c0_i32_1 = arith.constant 0 : i32
    return %arg0, %c0_i32, %c0_i32_0 : i32, i32, i32
  }
}

</mosaic_0001>

<bundles_post_ra>
// kernel: tpu_custom_call.1
= control target key start
LH: loop header
LB: loop body
LE: loop exit
PB: predicated region body
PF: predicated region fallthrough
CT: control target
= control target key end

     0   :  { %6 = vsyncpa [#allocation3], 0  ;;  %s670_s0 = inlined_call_operand.hbm [shape: f32[8,2,16,16], index: 0, kind: input, shape index: {}]   ;;  %s671_s1 = inlined_call_operand.hbm [shape: f32[8,16,32], index: 1, kind: output, shape index: {}]  }
   0x1   :  { %8 = vsyncpa [#allocation3 + $0x1], 0 }
   0x2   :  { %9 = vsyncpa [#allocation4], 0 }
   0x3   :  { %11 = vsyncpa [#allocation4 + $0x1], 0  ;;  %s489_s6 = smov 0   ;;  %s491_s7 = smov 0  }
   0x4   :  { %s493_s8 = smov 0   ;;  %s495_s9 = smov 0  }
   0x5 LB: > { %s510_s10 = sadd.s32 4294967295, %s472_s9   ;;  %s297_s11 = sadd.s32 4294967294, %s472_s9   ;;  %s472_s9 = sphi %s495_s9, %s681_s9   ;;  %s468_s8 = sphi %s493_s8, %s680_s8   ;;  %s464_s7 = sphi %s491_s7, %s679_s7   ;;  %s460_s6 = sphi %s489_s6, %s678_s6  }
   0x6   : > { %s514_s12 = sadd.s32 1, %s472_s9   ;;  %s24_s13 = sadd.s32 1, %s468_s8 }
   0x7   : > { %s21_s14 = ssub.s32 %s472_s9, %s514_s12  ;;  %p31_p0 = scmp.ne.s32.totalorder %s468_s8, %s464_s7 }
   0x8   : > { %p22_p1 = scmp.eq.s32.totalorder %s21_s14, 0  ;;  %p32_p2 = scmp.eq.s32.totalorder %s472_s9, 0 }
   0x9   : > { %p37_p3 = scmp.ne.s32.totalorder %s464_s7, %s460_s6  ;;  %p38_p4 = scmp.eq.s32.totalorder %s510_s10, 0 }
   0xa   : > { %s526_s15 = scalar_select %p22_p1, %s468_s8, %s24_s13  }
   0xb   : > { %p528_p5 = por %p32_p2, %p31_p0  ;;  %p532_p6 = por %p38_p4, %p37_p3 }
   0xc   : > { %p61_p7 = scmp.eq.s32.totalorder %s510_s10, 1  ;;  %p67_p8 = scmp.eq.s32.totalorder %s297_s11, 1 }
   0xd   : > { %p337_p10 = scmp.lt.s32.totalorder %s472_s9, 2  ;;  %s87_s20 = sand.u32 1, %s468_s8  }
   0xe   : > { %p539_p11 = por %p61_p7, %p31_p0  ;;  %p543_p12 = por %p67_p8, %p37_p3 }
   0xf   : > { %s322_s21 = sshll.u32 %s472_s9, 7  ;;  %s300_s22 = sshll.u32 %s87_s20, 7 }
  0x10   : > { %s97_s25 = scalar_lea.hbm %s670_s0, %s322_s21  ;;  %s91_s27 = scalar_lea.vmem [#allocation2], %s300_s22 }
  0x11   : > { %s98_s26 = sshll.u32 %s97_s25, 4  ;;  %s100_s28 = sshll.u32 %s91_s27, 4  ;;  %s99_s26 = int_to_ptr.hbm [resolvable:$true] %s98_s26  ;;  %s101_s28 = int_to_ptr.vmem [resolvable:$true] %s100_s28 }
  0x12   : > { %p554_p13 = pnand %p337_p10, %p528_p5  ;;  %p304_p0 = scmp.ge.s32.totalorder %s472_s9, 1 }
  0x13   : > { %p108_p1 = scmp.lt.s32.totalorder %s472_s9, 3  ;;  %s88_s30 = scalar_lea.sflag [#allocation3], %s87_s20 }
  0x14   : > { %s376_s2 = sshra.s32 %s99_s26, 4  ;;  %p380_p3 = pneg %p554_p13  ;;  %s377_s2 = int_to_ptr.hbm [resolvable:$true] %s376_s2 }
  0x15   : > { %s378_s3 = scalar_lea.hbm %s377_s2, 128  ;;  %s383_s11 = scalar_lea.hbm %s670_s0, 256 }
  0x16   : > { %p379_p2 = scmp.ne.s32.totalorder %s377_s2, %s378_s3  ;;  %p384_p5 = scmp.lt.s32.totalorder %s377_s2, %s670_s0 }
  0x17   : > { %p385_p8 = scmp.lt.s32.totalorder %s383_s11, %s378_s3 }
  0x18   : > { %p381_p4 = pnand %p380_p3, %p379_p2 }
  0x19   : > { %p386_p10 = por %p385_p8, %p384_p5 }
  0x1a   : > { %p382_p7 = pneg %p381_p4 }
  0x1c   : > { %p387_p9 = pnand %p386_p10, %p382_p7 }
  0x1e   : > { %390 = shalt.err (!%p387_p9)
}
  0x1f   : > { %s474_s16 = smov 128   ;;  %s475_s20 = smov 8  }
  0x20   : > { %332 = dma.hbm_to_vmem [thread:$0]  (!%p554_p13), %s99_s26, 2048, %s101_s28, %s88_s30, %s474_s16, %s474_s16, %s475_s20  }
  0x21   : > { %p109_p2 = pnand %p304_p0, %p108_p1 }
  0x22   : > { %s575_s21 = sand.u32 (!%p109_p2), 1, %s464_s7  }
  0x23   : > { %112 = sbr.rel (%p109_p2) target bundleno = 178 (0xb2), region = 24  ;;  %s305_s22 = sshll.u32 (!%p109_p2), %s575_s21, 7 }
  0x24   : > { %s115_s23 = scalar_lea.sflag (!%p109_p2), [#allocation3], %s575_s21  ;;  %s579_s24 = scalar_lea.vmem (!%p109_p2), [#allocation2], %s305_s22 }
  0x28   : > { %451 = dma.done.wait (%p532_p6), %s115_s23, 2048  }
  0x29   : > { %453 = vsyncadd (%p532_p6), %s115_s23, 4294965248  ;;  %v309_v0 = vld [vmem:[%s579_s24 + $0x30] sm:$0xff]  ;;  %s476_s25 = smov 16   ;;  %v310_v3 = vld [vmem:[%s579_s24 + $0x38] sm:$0xff]  ;;  %s306_s17 = sshll.u32 %s575_s21, 6  ;;  %vm148_vm0 = vcmask 130048  }
  0x2a   : > { %v307_v1 = vld [vmem:[%s579_s24 + $0x10] sm:$0xff]  ;;  %178 = vrot.lane.b32.xlu1 %v309_v0, %s476_s25  ;;  %v308_v4 = vld [vmem:[%s579_s24 + $0x18] sm:$0xff]  ;;  %v142_v8 = vld [vmem:[%s579_s24 + $0x20] sm:$0xff]  ;;  %s596_s26 = scalar_lea.vmem [#allocation5], %s306_s17  ;;  %vm198_vm1 = vcmask 261248   ;;  %s324_s27 = sshll.u32 %s510_s10, 6 }
  0x2b   : > { %174 = vrot.lane.b32.xlu0 %v307_v1, %s476_s25  ;;  %v311_v2 = vld [vmem:[%s579_s24 + $0x50] sm:$0xff]  ;;  %v312_v5 = vld [vmem:[%s579_s24 + $0x58] sm:$0xff]  ;;  %v140_v9 = vld [vmem:[%s579_s24] sm:$0xff]  ;;  %s220_s30 = scalar_lea.hbm %s671_s1, %s324_s27  ;;  %s221_s2 = sshll.u32 %s596_s26, 4  ;;  %s222_s2 = int_to_ptr.vmem [resolvable:$true] %s221_s2 }
  0x2c   : > { %182 = vrot.lane.b32.xlu2 %v311_v2, %s476_s25  ;;  %v314_v6 = vld [vmem:[%s579_s24 + $0x78] sm:$0xff]  ;;  %v313_v7 = vld [vmem:[%s579_s24 + $0x70] sm:$0xff]  ;;  %151 = vst.msk [vmem:[%s596_s26 + $0x10] sm:$0xff] %vm148_vm0, %v142_v8  ;;  %s223_s3 = sshll.u32 %s220_s30, 4  ;;  %s208_s10 = scalar_lea.sflag [#allocation4], %s575_s21  ;;  %s224_s3 = int_to_ptr.hbm [resolvable:$true] %s223_s3 }
  0x2d   : > { %149 = vst.msk [vmem:[%s596_s26] sm:$0xff] %vm148_vm0, %v140_v9  ;;  %v144_v10 = vld [vmem:[%s579_s24 + $0x40] sm:$0xff]  ;;  %v143_v11 = vld [vmem:[%s579_s24 + $0x28] sm:$0xff]  ;;  %s420_s4 = sshra.s32 %s224_s3, 4  ;;  %s426_s14 = scalar_lea.hbm %s671_s1, 128  ;;  %s421_s4 = int_to_ptr.hbm [resolvable:$true] %s420_s4 }
  0x2e   : > { %153 = vst.msk [vmem:[%s596_s26 + $0x20] sm:$0xff] %vm148_vm0, %v144_v10  ;;  %v141_v12 = vld [vmem:[%s579_s24 + $0x8] sm:$0xff]  ;;  %v146_v16 = vld [vmem:[%s579_s24 + $0x60] sm:$0xff]  ;;  %s422_s5 = scalar_lea.hbm %s421_s4, 64  ;;  %p427_p0 = scmp.lt.s32.totalorder %s421_s4, %s671_s1 }
  0x2f   : > { %152 = vst.msk [vmem:[%s596_s26 + $0x18] sm:$0xff] %vm148_vm0, %v143_v11  ;;  %v145_v14 = vld [vmem:[%s579_s24 + $0x48] sm:$0xff]  ;;  %p423_p6 = scmp.ne.s32.totalorder %s421_s4, %s422_s5  ;;  %p428_p1 = scmp.lt.s32.totalorder %s426_s14, %s422_s5 }
  0x30   : > { %150 = vst.msk [vmem:[%s596_s26 + $0x8] sm:$0xff] %vm148_vm0, %v141_v12  ;;  %v147_v15 = vld [vmem:[%s579_s24 + $0x68] sm:$0xff] }
  0x31   : > { %154 = vst.msk [vmem:[%s596_s26 + $0x28] sm:$0xff] %vm148_vm0, %v145_v14  ;;  %p424_p9 = pnand %p423_p6, %p539_p11  ;;  %p429_p3 = por %p428_p1, %p427_p0 }
  0x32   : > { %180 = vrot.lane.b32.xlu1 %v310_v3, %s476_s25  ;;  %156 = vst.msk [vmem:[%s596_s26 + $0x38] sm:$0xff] %vm148_vm0, %v147_v15 }
  0x33   : > { %176 = vrot.lane.b32.xlu0 %v308_v4, %s476_s25  ;;  %155 = vst.msk [vmem:[%s596_s26 + $0x30] sm:$0xff] %vm148_vm0, %v146_v16  ;;  %p425_p13 = pneg %p424_p9 }
  0x34   : > { %184 = vrot.lane.b32.xlu2 %v312_v5, %s476_s25 }
  0x35   : > { %p430_p4 = pnand %p429_p3, %p425_p13 }
  0x3a   : > { %188 = vrot.lane.b32.xlu1 %v314_v6, %s476_s25 }
  0x3b   : > { %186 = vrot.lane.b32.xlu0 %v313_v7, %s476_s25 }
  0x86   : > { %v183_v13 = vpop.permute.xlu2 %182 }
  0x87   : > { %203 = vst.msk [vmem:[%s596_s26 + $0x20] sm:$0xff] %vm198_vm1, %v183_v13 }
  0x8e   : > { %v185_v17 = vpop.permute.xlu2 %184 }
  0x8f   : > { %204 = vst.msk [vmem:[%s596_s26 + $0x28] sm:$0xff] %vm198_vm1, %v185_v17 }
  0x9c   : > { %v179_v18 = vpop.permute.xlu1 %178 }
  0x9d   : > { %v175_v19 = vpop.permute.xlu0 %174  ;;  %201 = vst.msk [vmem:[%s596_s26 + $0x10] sm:$0xff] %vm198_vm1, %v179_v18 }
  0x9e   : > { %199 = vst.msk [vmem:[%s596_s26] sm:$0xff] %vm198_vm1, %v175_v19 }
  0xa4   : > { %v181_v20 = vpop.permute.xlu1 %180 }
  0xa5   : > { %v177_v21 = vpop.permute.xlu0 %176  ;;  %202 = vst.msk [vmem:[%s596_s26 + $0x18] sm:$0xff] %vm198_vm1, %v181_v20 }
  0xa6   : > { %200 = vst.msk [vmem:[%s596_s26 + $0x8] sm:$0xff] %vm198_vm1, %v177_v21 }
  0xac   : > { %v189_v22 = vpop.permute.xlu1 %188 }
  0xad   : > { %v187_v23 = vpop.permute.xlu0 %186  ;;  %206 = vst.msk [vmem:[%s596_s26 + $0x38] sm:$0xff] %vm198_vm1, %v189_v22 }
  0xae   : > { %205 = vst.msk [vmem:[%s596_s26 + $0x30] sm:$0xff] %vm198_vm1, %v187_v23 }
  0xaf   : > { %433 = shalt.err (!%p430_p4)
}
  0xb0   : > { %s477_s21 = smov 128   ;;  %s478_s22 = smov 8  }
  0xb1   : > { %327 = dma.vmem_to_hbm [thread:$0]  (%p539_p11), %s222_s2, 1024, %s224_s3, %s208_s10, %s477_s21, %s477_s21, %s478_s22  }
  0xb2 PF: > { %s238_s23 = sand.u32 1, %s460_s6   ;;  %p677_p7 = scmp.ge.s32.totalorder %s472_s9, 2 }
  0xb3   : > { %s239_s24 = scalar_lea.sflag [#allocation4], %s238_s23 }
  0xb4   : > { %p334_p5 = pnand %p677_p7, %p543_p12 }
  0xb6   : > { %p335_p8 = pneg %p334_p5 }
  0xb8   : > { %455 = dma.done.wait (%p335_p8), %s239_s24, 1024  }
  0xb9   : > { %457 = vsyncadd (%p335_p8), %s239_s24, 4294966272  ;;  %p14_p10 = scmp.ge.s32.totalorder %s514_s12, 4   ;;  %s678_s6 = smov %s464_s7 }
  0xba   : > { %s679_s7 = smov %s468_s8  ;;  %s680_s8 = smov %s526_s15 }
  0xbb   : > { %s681_s9 = smov %s514_s12  ;;  %16 = sbr.rel (!%p14_p10) target bundleno = 5 (0x5), region = 70 }
  0xc0   :  { %245 = vsyncpa [#allocation3], 1 }
  0xc1   :  { %247 = vsyncpa [#allocation3 + $0x1], 1 }
  0xc2   :  { %248 = vsyncpa [#allocation4], 1 }
  0xc3   :  { %250 = vsyncpa [#allocation4 + $0x1], 1 }

</bundles_post_ra>
